<compile_context>
chip_gen: v5e
topology: v5e:2x2
jax: 0.10.0
libtpu: 0.0.40
codegen_flags: <defaults>
</compile_context>

<pallas_src>
import functools

import jax
import jax.numpy as jnp
from jax.experimental import pallas as pl
from jax.experimental.pallas import tpu as pltpu


# --------------------------------------------------------------------------- #
# Kernel
# --------------------------------------------------------------------------- #
def _attention_kernel(hid_ref, enc_ref, wh_ref, we_ref, b_ref, v_ref, out_ref,
                      *, s_chunk):
    # hid_ref: (TB, Dd) bf16     enc_ref: (S, TB, E2) bf16
    # wh_ref : (Dd, Dd) bf16     we_ref : (E2, Dd) bf16
    # b_ref  : (1, Dd) f32       v_ref  : (1, Dd) f32
    # out_ref: (TB, S) f32
    S, TB, E2 = enc_ref.shape
    Dd = wh_ref.shape[1]

    # Hidden projection + bias, shared across all src positions: (TB, Dd) f32.
    hid_proj = (
        jnp.dot(hid_ref[...], wh_ref[...], preferred_element_type=jnp.float32)
        + b_ref[...]
    )
    we = we_ref[...]                       # (E2, Dd) bf16, hoisted out of loop
    v_row = v_ref[...]                     # (1, Dd) f32

    # Encoder projection + tanh + v-reduce, chunked over src_len so the
    # (chunk, TB, Dd) f32 intermediates stay bounded regardless of S.
    # (If even TB=8 blew the VMEM budget, the next step would be an
    #  'arbitrary' S grid axis with online softmax; not needed here.)
    score_chunks = []
    s0 = 0
    while s0 < S:
        cs = min(s_chunk, S - s0)
        enc_c = enc_ref[pl.ds(s0, cs)]                         # (cs, TB, E2) bf16
        proj = jnp.dot(enc_c.reshape(cs * TB, E2), we,
                       preferred_element_type=jnp.float32)     # (cs*TB, Dd) f32
        proj = proj.reshape(cs, TB, Dd)
        energy = jnp.tanh(proj + hid_proj[None, :, :])         # (cs, TB, Dd) f32
        # Scores via VPU multiply + lane reduce (avoids an N=1 MXU matmul).
        score_chunks.append(jnp.sum(energy * v_row[None, :, :], axis=-1))
        s0 += cs

    score = (score_chunks[0] if len(score_chunks) == 1
             else jnp.concatenate(score_chunks, axis=0))       # (S, TB)
    score = score.T                                            # (TB, S), lane-dense

    # Softmax over src_len (lane axis); exact normalization so rows sum to 1.
    m = jnp.max(score, axis=-1, keepdims=True)
    e = jnp.exp(score - m)
    denom = jnp.sum(e, axis=-1, keepdims=True)
    out_ref[...] = e / denom


# --------------------------------------------------------------------------- #
# Tile / VMEM sizing helpers
# --------------------------------------------------------------------------- #
def _round_up(x, m):
    return (x + m - 1) // m * m


def _cdiv(a, b):
    return -(-a // b)


def _vmem_capacity_bytes():
    """Per-generation VMEM capacity (128 MiB v5e/v6e, 64 MiB per-TC v7x)."""
    try:
        return int(pltpu.get_tpu_info().vmem_capacity_bytes)
    except Exception:
        return 128 * 1024 * 1024


def _est_vmem_bytes(tb, sc, S, E2, Dd):
    enc_blk = 2 * S * tb * E2 * 2                      # bf16 encoder block, double-buffered
    hid_blk = 2 * tb * Dd * 2                          # bf16 hidden block, double-buffered
    weights = E2 * Dd * 2 + Dd * Dd * 2 + 2 * Dd * 4   # single-buffered invariants
    out_blk = 2 * tb * S * 4                           # f32 output block, double-buffered
    interm = 2 * sc * tb * Dd * 4                      # proj + energy f32 per chunk
    interm += 2 * S * tb * 4                           # score + its transpose
    return enc_blk + hid_blk + weights + out_blk + interm


def _pick_tiles(B, S, E2, Dd, budget_bytes, min_grid_steps):
    """Largest batch tile (and src-len chunk) that fits the VMEM budget."""
    b8 = _round_up(max(B, 1), 8)
    if b8 <= 8:
        gran, tb_cap = 8, 8            # block == full (padded) batch dim
    else:
        gran = 16                      # bf16 sublane packing on the batch axis
        tb_cap = _round_up(b8, gran)
        if min_grid_steps > 1:         # keep >= min_grid_steps grid steps (v7x)
            tb_cap = min(tb_cap,
                         max(gran, _round_up(_cdiv(b8, min_grid_steps), gran)))

    interm_cap = min(8 * 1024 * 1024, max(budget_bytes // 4, 1))

    def s_chunk_for(tb):
        per_pos = 2 * tb * Dd * 4      # proj + energy f32 bytes per src position
        return max(1, min(S, interm_cap // max(per_pos, 1)))

    tb = gran
    for cand in range(tb_cap, gran - 1, -gran):
        if _est_vmem_bytes(cand, s_chunk_for(cand), S, E2, Dd) <= budget_bytes:
            tb = cand
            break
    return tb, s_chunk_for(tb)


# --------------------------------------------------------------------------- #
# Wrapper
# --------------------------------------------------------------------------- #
def attention_forward(hidden, encoder_outputs, w_attn, b_attn, w_v):
    """hidden: (B, Dd); encoder_outputs: (S, B, 2*De) -- PyTorch axis order."""
    S, B, E2 = encoder_outputs.shape
    Dd = hidden.shape[1]

    vmem_cap = _vmem_capacity_bytes()
    vmem_limit = int(0.70 * vmem_cap)
    budget = int(0.70 * vmem_limit)
    # v7x heuristic: 64 MiB per-TC VMEM => 2 TensorCores => want >= 2 steps/core.
    min_grid_steps = 4 if vmem_cap <= 64 * 1024 * 1024 else 1

    TB, s_chunk = _pick_tiles(B, S, E2, Dd, budget, min_grid_steps)
    Bp = _round_up(B, TB)

    # One-time bf16 cast of the dominant tensor (kernel is HBM-bound); f32
    # accumulation is preserved inside the kernel.  tanh / softmax stay f32.
    hid = hidden.astype(jnp.bfloat16)
    enc = encoder_outputs.astype(jnp.bfloat16)
    if Bp != B:
        # Zero-pad the batch so every tile is full; rows are independent and
        # padded rows are sliced off below.
        hid = jnp.pad(hid, ((0, Bp - B), (0, 0)))
        enc = jnp.pad(enc, ((0, 0), (0, Bp - B), (0, 0)))

    # Split the attn weight along the concat order: cat = (hidden, enc).
    w_t = w_attn.T                                    # (Dd + E2, Dd)
    wh = w_t[:Dd].astype(jnp.bfloat16)                # (Dd, Dd)
    we = w_t[Dd:].astype(jnp.bfloat16)                # (E2, Dd)
    b2 = b_attn.reshape(1, Dd).astype(jnp.float32)    # (1, Dd)
    v2 = w_v.reshape(1, Dd).astype(jnp.float32)       # (1, Dd)

    invariant = pl.Buffered(1)   # single-buffer the grid-invariant operands

    grid_spec = pltpu.PrefetchScalarGridSpec(
        num_scalar_prefetch=0,
        grid=(Bp // TB,),
        in_specs=[
            pl.BlockSpec((TB, Dd), lambda i: (i, 0)),        # hidden tile
            pl.BlockSpec((S, TB, E2), lambda i: (0, i, 0)),  # enc, original (S,B,E2) layout
            pl.BlockSpec((Dd, Dd), lambda i: (0, 0), pipeline_mode=invariant),  # Wh
            pl.BlockSpec((E2, Dd), lambda i: (0, 0), pipeline_mode=invariant),  # We
            pl.BlockSpec((1, Dd), lambda i: (0, 0), pipeline_mode=invariant),   # bias
            pl.BlockSpec((1, Dd), lambda i: (0, 0), pipeline_mode=invariant),   # v
        ],
        out_specs=pl.BlockSpec((TB, S), lambda i: (i, 0)),
    )

    kernel = functools.partial(_attention_kernel, s_chunk=s_chunk)

    out = pl.pallas_call(
        kernel,
        out_shape=jax.ShapeDtypeStruct((Bp, S), jnp.float32),
        grid_spec=grid_spec,
        compiler_params=pltpu.CompilerParams(
            dimension_semantics=("parallel",),
            vmem_limit_bytes=vmem_limit,
        ),
    )(hid, enc, wh, we, b2, v2)

    return out[:B] if Bp != B else out


def attention_reference(hidden, encoder_outputs, w_attn, b_attn, w_v):
    """Pure-JAX (f32) reference mirroring the PyTorch forward exactly."""
    S, B, _ = encoder_outputs.shape
    hid_rep = jnp.repeat(hidden[:, None, :], S, axis=1)          # (B, S, Dd)
    enc = jnp.transpose(encoder_outputs, (1, 0, 2))              # (B, S, 2*De)
    cat = jnp.concatenate([hid_rep, enc], axis=2)                # (B, S, Dd+2*De)
    energy = jnp.tanh(cat @ w_attn.T + b_attn)                   # (B, S, Dd)
    attention = (energy @ w_v.T)[..., 0]                         # (B, S)
    return jax.nn.softmax(attention, axis=1)


if __name__ == "__main__":
    # small shapes consistent with the module
    batch = 2
    src_len = 8
    enc_hid_dim = 16   # encoder outputs carry 2*enc_hid_dim features
    dec_hid_dim = 32

    key = jax.random.PRNGKey(0)
    k1, k2, k3, k4, k5 = jax.random.split(key, 5)

    hidden = jax.random.normal(k1, (batch, dec_hid_dim), dtype=jnp.float32)
    encoder_outputs = jax.random.normal(
        k2, (src_len, batch, 2 * enc_hid_dim), dtype=jnp.float32
    )

    # deterministic parameter init (nn.Linear shapes)
    in_dim = 2 * enc_hid_dim + dec_hid_dim
    w_attn = 0.1 * jax.random.normal(k3, (dec_hid_dim, in_dim), dtype=jnp.float32)
    b_attn = 0.1 * jax.random.normal(k4, (dec_hid_dim,), dtype=jnp.float32)
    w_v = 0.1 * jax.random.normal(k5, (1, dec_hid_dim), dtype=jnp.float32)

    out = attention_forward(hidden, encoder_outputs, w_attn, b_attn, w_v)
    out = jax.block_until_ready(out)

    ref = attention_reference(hidden, encoder_outputs, w_attn, b_attn, w_v)
    assert out.shape == (batch, src_len)
    # exact softmax normalization inside the kernel -> rows sum to 1
    assert jnp.allclose(jnp.sum(out, axis=1), 1.0, atol=1e-4)
    # bf16 matmul operands (f32 accumulation) => slightly looser tol vs f32 ref
    assert jnp.allclose(out, ref, atol=2e-2), (
        f"Pallas output mismatch vs reference; max diff "
        f"{float(jnp.max(jnp.abs(out - ref)))}"
    )

    print("KERNEL_OK")
</pallas_src>

<mosaic_0001>
module attributes {stable_mosaic.version = 11 : i64} {
  func.func @_attention_kernel(%arg0: i32, %arg1: memref<8x32xbf16, #tpu.memory_space<vmem>>, %arg2: memref<8x8x32xbf16, #tpu.memory_space<vmem>>, %arg3: memref<32x32xbf16, #tpu.memory_space<vmem>>, %arg4: memref<32x32xbf16, #tpu.memory_space<vmem>>, %arg5: memref<1x32xf32, #tpu.memory_space<vmem>>, %arg6: memref<1x32xf32, #tpu.memory_space<vmem>>, %arg7: memref<8x8xf32, #tpu.memory_space<vmem>>) attributes {dimension_semantics = [#tpu.dimension_semantics<parallel>], iteration_bounds = array<i64: 1>, scalar_prefetch = 0 : i64, scratch_operands = 0 : i64, tpu.core_type = #tpu.core_type<tc>, window_params = [{transform_indices = @transform_0, window_bounds = array<i64: 8, 32>}, {transform_indices = @transform_1, window_bounds = array<i64: 8, 8, 32>}, {pipeline_mode = #tpu.pipeline_mode<synchronous>, transform_indices = @transform_2, window_bounds = array<i64: 32, 32>}, {pipeline_mode = #tpu.pipeline_mode<synchronous>, transform_indices = @transform_3, window_bounds = array<i64: 32, 32>}, {pipeline_mode = #tpu.pipeline_mode<synchronous>, transform_indices = @transform_4, window_bounds = array<i64: 1, 32>}, {pipeline_mode = #tpu.pipeline_mode<synchronous>, transform_indices = @transform_5, window_bounds = array<i64: 1, 32>}, {transform_indices = @transform_6, window_bounds = array<i64: 8, 8>}]} {
    %c0 = arith.constant 0 : index
    %c0_0 = arith.constant 0 : index
    %0 = vector.load %arg1[%c0, %c0_0] : memref<8x32xbf16, #tpu.memory_space<vmem>>, vector<8x32xbf16>
    %c0_1 = arith.constant 0 : index
    %c0_2 = arith.constant 0 : index
    %1 = vector.load %arg3[%c0_1, %c0_2] : memref<32x32xbf16, #tpu.memory_space<vmem>>, vector<32x32xbf16>
    %cst = arith.constant dense<0.000000e+00> : vector<8x32xf32>
    %2 = tpu.matmul %0, %1, %cst {dimension_numbers = #tpu.dot_dimension_numbers<[1], [0], [0], [1], [0, 0, 1, 1], [], []>} : vector<8x32xbf16>, vector<32x32xbf16>, vector<8x32xf32> -> vector<8x32xf32>
    %c0_3 = arith.constant 0 : index
    %c0_4 = arith.constant 0 : index
    %3 = vector.load %arg5[%c0_3, %c0_4] : memref<1x32xf32, #tpu.memory_space<vmem>>, vector<1x32xf32>
    %4 = vector.broadcast %3 : vector<1x32xf32> to vector<8x32xf32>
    %5 = arith.addf %2, %4 : vector<8x32xf32>
    %c0_5 = arith.constant 0 : index
    %c0_6 = arith.constant 0 : index
    %6 = vector.load %arg4[%c0_5, %c0_6] : memref<32x32xbf16, #tpu.memory_space<vmem>>, vector<32x32xbf16>
    %c0_7 = arith.constant 0 : index
    %c0_8 = arith.constant 0 : index
    %7 = vector.load %arg6[%c0_7, %c0_8] : memref<1x32xf32, #tpu.memory_space<vmem>>, vector<1x32xf32>
    %c0_9 = arith.constant 0 : index
    %c0_10 = arith.constant 0 : index
    %c0_11 = arith.constant 0 : index
    %8 = vector.load %arg2[%c0_9, %c0_10, %c0_11] : memref<8x8x32xbf16, #tpu.memory_space<vmem>>, vector<8x8x32xbf16>
    %9 = vector.shape_cast %8 : vector<8x8x32xbf16> to vector<64x32xbf16>
    %cst_12 = arith.constant dense<0.000000e+00> : vector<64x32xf32>
    %10 = tpu.matmul %9, %6, %cst_12 {dimension_numbers = #tpu.dot_dimension_numbers<[1], [0], [0], [1], [0, 0, 1, 1], [], []>} : vector<64x32xbf16>, vector<32x32xbf16>, vector<64x32xf32> -> vector<64x32xf32>
    %11 = vector.shape_cast %10 : vector<64x32xf32> to vector<8x8x32xf32>
    %12 = vector.shape_cast %5 : vector<8x32xf32> to vector<1x8x32xf32>
    %13 = vector.broadcast %12 : vector<1x8x32xf32> to vector<8x8x32xf32>
    %14 = arith.addf %11, %13 : vector<8x8x32xf32>
    %15 = math.tanh %14 : vector<8x8x32xf32>
    %16 = vector.shape_cast %7 : vector<1x32xf32> to vector<1x1x32xf32>
    %17 = vector.broadcast %16 : vector<1x1x32xf32> to vector<8x8x32xf32>
    %18 = arith.mulf %15, %17 : vector<8x8x32xf32>
    %cst_13 = arith.constant dense<0.000000e+00> : vector<8x8xf32>
    %19 = vector.multi_reduction <add>, %18, %cst_13 [2] : vector<8x8x32xf32> to vector<8x8xf32>
    %20 = tpu.transpose %19, [1, 0] : vector<8x8xf32> -> vector<8x8xf32>
    %cst_14 = arith.constant dense<0xFF800000> : vector<8xf32>
    %21 = vector.multi_reduction <maximumf>, %20, %cst_14 [1] : vector<8x8xf32> to vector<8xf32>
    %22 = vector.shape_cast %21 : vector<8xf32> to vector<8x1xf32>
    %23 = vector.broadcast %22 : vector<8x1xf32> to vector<8x8xf32>
    %24 = arith.subf %20, %23 : vector<8x8xf32>
    %25 = math.exp %24 : vector<8x8xf32>
    %cst_15 = arith.constant dense<0.000000e+00> : vector<8xf32>
    %26 = vector.multi_reduction <add>, %25, %cst_15 [1] : vector<8x8xf32> to vector<8xf32>
    %27 = vector.shape_cast %26 : vector<8xf32> to vector<8x1xf32>
    %28 = vector.broadcast %27 : vector<8x1xf32> to vector<8x8xf32>
    %29 = arith.divf %25, %28 : vector<8x8xf32>
    %c0_16 = arith.constant 0 : index
    %c0_17 = arith.constant 0 : index
    %30 = vector.load %arg7[%c0_16, %c0_17] : memref<8x8xf32, #tpu.memory_space<vmem>>, vector<8x8xf32>
    tpu.vector_store %arg7[%c0_16, %c0_17], %29 {strides = array<i32>} : memref<8x8xf32, #tpu.memory_space<vmem>>, vector<8x8xf32>,
    return
  }
  func.func @transform_0(%arg0: i32) -> (i32, i32) {
    %c0_i32 = arith.constant 0 : i32
    %c0_i32_0 = arith.constant 0 : i32
    return %arg0, %c0_i32 : i32, i32
  }
  func.func @transform_1(%arg0: i32) -> (i32, i32, i32) {
    %c0_i32 = arith.constant 0 : i32
    %c0_i32_0 = arith.constant 0 : i32
    %c0_i32_1 = arith.constant 0 : i32
    return %c0_i32, %arg0, %c0_i32_0 : i32, i32, i32
  }
  func.func @transform_2(%arg0: i32) -> (i32, i32) {
    %c0_i32 = arith.constant 0 : i32
    %c0_i32_0 = arith.constant 0 : i32
    %c0_i32_1 = arith.constant 0 : i32
    return %c0_i32, %c0_i32_0 : i32, i32
  }
  func.func @transform_3(%arg0: i32) -> (i32, i32) {
    %c0_i32 = arith.constant 0 : i32
    %c0_i32_0 = arith.constant 0 : i32
    %c0_i32_1 = arith.constant 0 : i32
    return %c0_i32, %c0_i32_0 : i32, i32
  }
  func.func @transform_4(%arg0: i32) -> (i32, i32) {
    %c0_i32 = arith.constant 0 : i32
    %c0_i32_0 = arith.constant 0 : i32
    %c0_i32_1 = arith.constant 0 : i32
    return %c0_i32, %c0_i32_0 : i32, i32
  }
  func.func @transform_5(%arg0: i32) -> (i32, i32) {
    %c0_i32 = arith.constant 0 : i32
    %c0_i32_0 = arith.constant 0 : i32
    %c0_i32_1 = arith.constant 0 : i32
    return %c0_i32, %c0_i32_0 : i32, i32
  }
  func.func @transform_6(%arg0: i32) -> (i32, i32) {
    %c0_i32 = arith.constant 0 : i32
    %c0_i32_0 = arith.constant 0 : i32
    return %arg0, %c0_i32 : i32, i32
  }
}

</mosaic_0001>

<bundles_post_ra>
// kernel: tpu_custom_call.1
= control target key start
LH: loop header
LB: loop body
LE: loop exit
PB: predicated region body
PF: predicated region fallthrough
CT: control target
= control target key end

     0   :  { %11 = vsyncpa [#allocation3], 0  ;;  %s657_s0 = inlined_call_operand.hbm [shape: bf16[8,32], index: 0, kind: input, shape index: {}]   ;;  %s658_s1 = inlined_call_operand.hbm [shape: bf16[8,8,32], index: 1, kind: input, shape index: {}]   ;;  %s659_s2 = inlined_call_operand.hbm [shape: bf16[32,32], index: 2, kind: input, shape index: {}]   ;;  %s660_s3 = inlined_call_operand.hbm [shape: bf16[32,32], index: 3, kind: input, shape index: {}]   ;;  %s661_s4 = inlined_call_operand.vmem [shape: f32[1,32], index: 4, kind: input, shape index: {}]   ;;  %s662_s5 = inlined_call_operand.vmem [shape: f32[1,32], index: 5, kind: input, shape index: {}]   ;;  %s663_s6 = inlined_call_operand.hbm [shape: f32[8,8], index: 6, kind: output, shape index: {}]  }
   0x1   :  { %12 = vsyncpa [#allocation6], 0 }
   0x2   :  { %13 = vsyncpa [#allocation9], 0  ;;  %s30_s23 = sshll.u32 %s658_s1, 4  ;;  %s31_s23 = int_to_ptr.hbm [resolvable:$true] %s30_s23 }
   0x3   :  { %14 = vsyncpa [#allocation4], 0  ;;  %s578_s24 = smov [#allocation5]   ;;  %s20_s28 = sshll.u32 %s657_s0, 4  ;;  %s21_s28 = int_to_ptr.hbm [resolvable:$true] %s20_s28 }
   0x4   :  { %s32_s25 = sshll.u32 %s578_s24, 4  ;;  %s579_s29 = smov 64   ;;  %s33_s25 = int_to_ptr.vmem [resolvable:$true] %s32_s25 }
   0x5   :  { %s580_s30 = smov 4   ;;  %s581_s7 = smov [#allocation2]  }
   0x6   :  { %38 = dma.hbm_to_vmem [thread:$0]  %s31_s23, 512, %s33_s25, [#allocation6], %s579_s29, %s579_s29, %s580_s30  }
   0x7   :  { %s22_s8 = sshll.u32 %s581_s7, 4  ;;  %s43_s11 = sshll.u32 %s659_s2, 4  ;;  %s23_s8 = int_to_ptr.vmem [resolvable:$true] %s22_s8  ;;  %s44_s11 = int_to_ptr.hbm [resolvable:$true] %s43_s11 }
   0x8   :  { %25 = dma.hbm_to_vmem [thread:$0]  %s21_s28, 64, %s23_s8, [#allocation3]  }
   0x9   :  { %s56_s13 = sshll.u32 %s660_s3, 4  ;;  %s582_s14 = smov [#allocation7]   ;;  %s57_s13 = int_to_ptr.hbm [resolvable:$true] %s56_s13 }
   0xa   :  { %s45_s15 = sshll.u32 %s582_s14, 4  ;;  %s583_s0 = smov [#allocation8]   ;;  %s46_s15 = int_to_ptr.vmem [resolvable:$true] %s45_s15 }
   0xb   :  { %51 = dma.hbm_to_vmem [thread:$0]  %s44_s11, 256, %s46_s15, [#allocation6], %s579_s29, %s579_s29, %s580_s30  }
   0xc   :  { %s58_s16 = sshll.u32 %s583_s0, 4  ;;  %s59_s16 = int_to_ptr.vmem [resolvable:$true] %s58_s16 }
   0xd   :  { %64 = dma.hbm_to_vmem [thread:$0]  %s57_s13, 256, %s59_s16, [#allocation9], %s579_s29, %s579_s29, %s580_s30  }
   0xe   :  { %570 = dma.done.wait [#allocation3], 64  }
   0xf   :  { %571 = vsyncadd [#allocation3], 4294967232 }
  0x10   :  { %572 = dma.done.wait [#allocation6], 768  }
  0x11   :  { %573 = vsyncadd [#allocation6], 4294966528 }
  0x12   :  { %574 = dma.done.wait [#allocation9], 256  }
  0x13   :  { %575 = vsyncadd [#allocation9], 4294967040  ;;  %v409_v0 = vld [vmem:[#allocation7 + $0x8] sm:$0xff]  ;;  %v411_v1 = vld [vmem:[#allocation8 + $0x8] sm:$0xff]  ;;  %vm107_vm0 = vcmask 261120   ;;  %v269_v56 = vlaneseq  ;;  %vm279_vm1 = vcmask 1041409  }
  0x14   :  { %117 = vmatpush.bf16.msra.mxu0 %v409_v0  ;;  %416 = vmatpush.bf16.msra.mxu2 %v411_v1  ;;  %v408_v2 = vld [vmem:[#allocation7] sm:$0xff]  ;;  %v410_v3 = vld [vmem:[#allocation8] sm:$0xff]  ;;  %v413_v4 = vld [vmem:[#allocation5 + $0x8] sm:$0xff]  ;;  %vm281_vm2 = vcmask 1042434   ;;  %vm283_vm3 = vcmask 1043459   ;;  %vm285_vm4 = vcmask 1044484  }
  0x15   :  { %417 = vmatpush.bf16.msra.mxu3 %v411_v1  ;;  %187 = vmatpush.bf16.msra.mxu1 %v411_v1  ;;  %v86_v5 = vld [vmem:[#allocation2] sm:$0xf]  ;;  %v412_v7 = vld [vmem:[#allocation5] sm:$0xff]  ;;  %v414_v8 = vld [vmem:[#allocation5 + $0x10] sm:$0xff]  ;;  %v270_v59 = vand.u32 127, %v269_v56  ;;  %vm287_vm5 = vcmask 1045509  }
  0x16   :  { %v415_v6 = vld [vmem:[#allocation5 + $0x18] sm:$0xff]  ;;  %vm289_vm6 = vcmask 1046534   ;;  %vm291_vm7 = vcmask 1047559   ;;  %vm326_vm8 = vcmask 64512   ;;  %s359_s21 = sshll.u32 %s663_s6, 4  ;;  %s360_s21 = int_to_ptr.hbm [resolvable:$true] %s359_s21 }
  0x17   :  { %v428_v9 = vld [vmem:[%s661_s4] ss:$0 sm:$0xff]  ;;  %s584_s4 = smov [#allocation10]  }
  0x18   :  { %118 = vmatpush.bf16.msra.mxu0 %v408_v2  ;;  %418 = vmatpush.bf16.msra.mxu2 %v410_v3  ;;  %v429_v18 = vld [vmem:[%s662_s5] ss:$0 sm:$0xff]  ;;  %s357_s5 = sshll.u32 %s584_s4, 4  ;;  %s358_s5 = int_to_ptr.vmem [resolvable:$true] %s357_s5 }
  0x19   :  { %419 = vmatpush.bf16.msra.mxu3 %v410_v3  ;;  %188 = vmatpush.bf16.msra.mxu1 %v410_v3 }
  0x1b   :  { %379 = vmatmul.msk.bf16.vlgmr.msra.gmra.mxu0 %vm107_vm0, %v86_v5  ;;  %405 = vmatmul.msk.bf16.vlgmr.msra.gmra.mxu2 %vm107_vm0, %v413_v4 }
  0x1c   :  { %407 = vmatmul.msk.bf16.vlgmr.msra.gmra.mxu3 %vm107_vm0, %v415_v6  ;;  %404 = vmatmul.msk.bf16.vlgmr.msra.gmra.mxu1 %vm107_vm0, %v412_v7 }
  0x2b   :  { %406 = vmatmul.msk.bf16.gmra.mxu2 %vm107_vm0, %v414_v8 }
  0x98   :  { %v120_v10 = vpop.f32.mrf.mxu0 }
  0x99   :  { %v121_v11 = vadd.f32 %v428_v9, %v120_v10  ;;  %v190_v12 = vpop.f32.mrf.mxu1 }
  0x9b   :  { %v210_v13 = vadd.f32 %v190_v12, %v121_v11 }
  0x9d   :  { %430 = vtanh.f32 %v210_v13 }
  0x9e   :  { %v195_v14 = vpop.f32.mrf.mxu2 }
  0x9f   :  { %v212_v15 = vadd.f32 %v195_v14, %v121_v11  ;;  %v205_v16 = vpop.f32.mrf.mxu3 }
  0xa0   :  { %v122_v17 = vpop.f32.mrf.mxu0  ;;  %v216_v22 = vadd.f32 %v205_v16, %v121_v11 }
  0xa1   :  { %432 = vtanh.f32 %v212_v15  ;;  %v192_v19 = vpop.f32.mrf.mxu1 }
  0xa2   :  { %v211_v20 = vadd.f32 %v192_v19, %v121_v11 }
  0xa3   :  { %v431_v21 = vpop.eup %430 }
  0xa4   :  { %434 = vtanh.f32 %v211_v20  ;;  %v229_v23 = vmul.f32 %v431_v21, %v429_v18 }
  0xa5   :  { %436 = vtanh.f32 %v216_v22 }
  0xa6   :  { %v197_v24 = vpop.f32.mrf.mxu2  ;;  %v237_v25 = vsel %vm107_vm0, %v229_v23, 0.0 }
  0xa7   :  { %v433_v26 = vpop.eup %432  ;;  %v213_v27 = vadd.f32 %v197_v24, %v121_v11  ;;  %v207_v28 = vpop.f32.mrf.mxu3  ;;  %238 = vadd.xlane.f32.xlu0 %v237_v25 }
  0xa8   :  { %v231_v29 = vmul.f32 %v433_v26, %v429_v18  ;;  %v217_v30 = vadd.f32 %v207_v28, %v121_v11 }
  0xa9   :  { %438 = vtanh.f32 %v213_v27 }
  0xaa   :  { %v435_v31 = vpop.eup %434  ;;  %v243_v32 = vsel %vm107_vm0, %v231_v29, 0.0  ;;  %440 = vtanh.f32 %v217_v30 }
  0xab   :  { %244 = vadd.xlane.f32.xlu1 %v243_v32  ;;  %v230_v33 = vmul.f32 %v435_v31, %v429_v18  ;;  %v437_v35 = vpop.eup %436 }
  0xac   :  { %v235_v41 = vmul.f32 %v437_v35, %v429_v18 }
  0xad   :  { %v240_v34 = vsel %vm107_vm0, %v230_v33, 0.0 }
  0xae   :  { %v200_v36 = vpop.f32.mrf.mxu2  ;;  %v255_v44 = vsel %vm107_vm0, %v235_v41, 0.0 }
  0xaf   :  { %v439_v37 = vpop.eup %438  ;;  %v214_v38 = vadd.f32 %v200_v36, %v121_v11  ;;  %241 = vadd.xlane.f32.xlu0 %v240_v34 }
  0xb0   :  { %v232_v39 = vmul.f32 %v439_v37, %v429_v18  ;;  %v441_v42 = vpop.eup %440 }
  0xb1   :  { %442 = vtanh.f32 %v214_v38  ;;  %v236_v45 = vmul.f32 %v441_v42, %v429_v18 }
  0xb2   :  { %v246_v40 = vsel %vm107_vm0, %v232_v39, 0.0 }
  0xb3   :  { %247 = vadd.xlane.f32.xlu1 %v246_v40  ;;  %v258_v50 = vsel %vm107_vm0, %v236_v45, 0.0 }
  0xb6   :  { %v202_v43 = vpop.f32.mrf.mxu2 }
  0xb7   :  { %v443_v46 = vpop.eup %442  ;;  %v215_v47 = vadd.f32 %v202_v43, %v121_v11  ;;  %256 = vadd.xlane.f32.xlu0 %v255_v44 }
  0xb8   :  { %v233_v48 = vmul.f32 %v443_v46, %v429_v18 }
  0xb9   :  { %444 = vtanh.f32 %v215_v47 }
  0xba   :  { %v249_v49 = vsel %vm107_vm0, %v233_v48, 0.0 }
  0xbb   :  { %250 = vadd.xlane.f32.xlu2 %v249_v49  ;;  %259 = vadd.xlane.f32.xlu1 %v258_v50 }
  0xbf   :  { %v445_v51 = vpop.eup %444 }
  0xc0   :  { %v234_v52 = vmul.f32 %v445_v51, %v429_v18 }
  0xc2   :  { %v252_v53 = vsel %vm107_vm0, %v234_v52, 0.0 }
  0xc3   :  { %253 = vadd.xlane.f32.xlu2 %v252_v53 }
 0x11a   :  { %v239_v54 = vpop.xlane.xlu0 %238 }
 0x11b   :  { %v271_v61 = vperm.slane %v239_v54, %v270_v59 }
 0x11e   :  { %v245_v55 = vpop.xlane.xlu1 %244 }
 0x11f   :  { %v273_v1 = vperm.slane %v245_v55, %v270_v59 }
 0x122   :  { %v242_v57 = vpop.xlane.xlu0 %241 }
 0x123   :  { %v272_v62 = vperm.slane %v242_v57, %v270_v59 }
 0x125   :  { %v280_v63 = vsel %vm279_vm1, %v272_v62, %v271_v61 }
 0x126   :  { %v248_v58 = vpop.xlane.xlu1 %247  ;;  %v282_v4 = vsel %vm281_vm2, %v273_v1, %v280_v63 }
 0x127   :  { %v274_v0 = vperm.slane %v248_v58, %v270_v59 }
 0x129   :  { %v284_v7 = vsel %vm283_vm3, %v274_v0, %v282_v4 }
 0x12a   :  { %v257_v3 = vpop.xlane.xlu0 %256 }
 0x12b   :  { %v277_v9 = vperm.slane %v257_v3, %v270_v59 }
 0x12e   :  { %v251_v60 = vpop.xlane.xlu2 %250  ;;  %v260_v5 = vpop.xlane.xlu1 %259 }
 0x12f   :  { %v275_v2 = vperm.slane %v251_v60, %v270_v59  ;;  %v278_v11 = vperm.slane %v260_v5, %v270_v59 }
 0x131   :  { %v286_v10 = vsel %vm285_vm4, %v275_v2, %v284_v7 }
 0x136   :  { %v254_v6 = vpop.xlane.xlu2 %253 }
 0x137   :  { %v276_v8 = vperm.slane %v254_v6, %v270_v59 }
 0x139   :  { %v288_v12 = vsel %vm287_vm5, %v276_v8, %v286_v10 }
 0x13a   :  { %v290_v13 = vsel %vm289_vm6, %v277_v9, %v288_v12 }
 0x13b   :  { %v292_v14 = vsel %vm291_vm7, %v278_v11, %v290_v13 }
 0x13c   :  { %294 = vxpose.xlu2.b32.start.end [1/1] (short) (narrow) %v292_v14, 8 }
 0x1d5   :  { %v310_v15 = vpop.trf.xlu2 }
 0x1d6   :  { %v327_v16 = vsel %vm326_vm8, %v310_v15, -inf }
 0x1d7   :  { %328 = vmax.xlane.f32.xlu0 %v327_v16 }
 0x24a   :  { %v329_v17 = vpop.xlane.xlu0 %328 }
 0x24b   :  { %v330_v18 = vsub.f32 %v310_v15, %v329_v17 }
 0x24d   :  { %v331_v19 = vmul.f32 1.442695, %v330_v18 }
 0x24f   :  { %446 = vpow2.f32 %v331_v19 }
 0x255   :  { %v447_v20 = vpop.eup %446 }
 0x256   :  { %v333_v21 = vsel %vm326_vm8, %v447_v20, 0.0 }
 0x257   :  { %334 = vadd.xlane.f32.xlu1 %v333_v21 }
 0x2ca   :  { %v335_v22 = vpop.xlane.xlu1 %334 }
 0x2cb   :  { %448 = vrcp.f32 %v335_v22  ;;  %v347_v26 = vand.u32 2147483648, %v335_v22  ;;  %v345_v28 = vand.u32 2147483647, %v335_v22  ;;  %vm341_vm10 = vweird.f32 %v335_v22 }
 0x2cd   :  { %v348_v30 = vor.u32 1.1754944e-38, %v347_v26  ;;  %vm346_vm12 = vcmp.eq.f32.partialorder %v345_v28, 8.507059e+37 }
 0x2d1   :  { %v449_v23 = vpop.eup %448 }
 0x2d2   :  { %v337_v24 = vmul.f32 %v449_v23, %v335_v22  ;;  %vm342_vm9 = vweird.f32 %v449_v23 }
 0x2d3   :  { %vm343_vm11 = vmor %vm341_vm10, %vm342_vm9 }
 0x2d4   :  { %v338_v25 = vsub.f32 1.0, %v337_v24 }
 0x2d6   :  { %v339_v27 = vmul.f32 %v449_v23, %v338_v25 }
 0x2d8   :  { %v340_v29 = vadd.f32 %v449_v23, %v339_v27 }
 0x2da   :  { %v344_v31 = vsel %vm343_vm11, %v449_v23, %v340_v29 }
 0x2db   :  { %v349_v32 = vsel %vm346_vm12, %v348_v30, %v344_v31 }
 0x2dc   :  { %v350_v33 = vmul.f32 %v447_v20, %v349_v32 }
 0x2de   :  { %351 = vst.msk [vmem:[#allocation10] sm:$0xff] %vm326_vm8, %v350_v33 }
 0x2df   :  { %362 = dma.vmem_to_hbm [thread:$0]  %s358_s5, 128, %s360_s21, [#allocation4]  }
 0x2e0   :  { %576 = dma.done.wait [#allocation4], 128  }
 0x2e1   :  { %577 = vsyncadd [#allocation4], 4294967168 }
 0x2e2   :  { %367 = vsyncpa [#allocation3], 1 }
 0x2e3   :  { %368 = vsyncpa [#allocation6], 1 }
 0x2e4   :  { %369 = vsyncpa [#allocation9], 1 }
 0x2e5   :  { %370 = vsyncpa [#allocation4], 1 }

</bundles_post_ra>
